<compile_context>
chip_gen: v7x
topology: tpu7x:2x2x1
jax: 0.10.0
libtpu: 0.0.40
codegen_flags: <defaults>
</compile_context>

<pallas_src>
import jax
import jax.numpy as jnp
from jax.experimental import pallas as pl
from jax.experimental.pallas import tpu as pltpu


# ---------------------------------------------------------------------------
# Kernel
# ---------------------------------------------------------------------------
def _residual_block_kernel(x_ref, w1s_ref, b1s_ref, w2_ref, b2_ref, o_ref):
    out_p = w2_ref.shape[0]                      # padded feature width (multiple of 128)
    x = x_ref[...]

    # One MXU pass of x against [w1*bn1_scale | w_shortcut]  -> lane-dense (tb, 2*OUT_P).
    hs = jnp.dot(x, w1s_ref[...], preferred_element_type=jnp.float32) + b1s_ref[...]

    h = jnp.maximum(hs[:, :out_p], 0.0)          # block[0..2]: Linear+BN1 (folded) -> ReLU
    sc = hs[:, out_p:]                           # shortcut Linear

    # block[3]: Dropout(0.3) — identity in eval mode.
    # TODO(synk): train-mode dropout not implemented.

    # block[4..5]: Linear+BN2 (folded)
    z = jnp.dot(h, w2_ref[...], preferred_element_type=jnp.float32) + b2_ref[...]

    # F.relu(block(x) + shortcut(x))
    o_ref[...] = jnp.maximum(z + sc, 0.0).astype(o_ref.dtype)


# ---------------------------------------------------------------------------
# Wrapper
# ---------------------------------------------------------------------------
def _round_up(x, m):
    return (x + m - 1) // m * m


def _vmem_estimate_bytes(tb, in_f, out_p):
    f32 = 4
    act = 2 * tb * in_f * f32 + 2 * tb * out_p * f32                 # x / out tiles, double-buffered
    wts = 2 * (in_f * 2 * out_p + out_p * out_p + 3 * out_p) * f32   # params (default double-buffer)
    tmp = 3 * tb * out_p * f32                                       # hs / h / z temporaries
    return act + wts + tmp


def _pick_tb(batch, in_f, out_p, vmem_budget_bytes):
    """Largest multiple-of-8 batch tile (<=256) that fits the VMEM budget and keeps
    >=2 grid steps when the batch allows it (v7x has 2 TensorCores)."""
    if batch <= 8:
        tb = 8
    else:
        tb = min(256, _round_up(-(-batch // 2), 8))   # ceil(B/2), rounded to 8, capped
    while tb > 8 and _vmem_estimate_bytes(tb, in_f, out_p) > vmem_budget_bytes:
        tb = max(8, _round_up(tb // 2, 8))
    return tb


def _fold_and_pad_params(params, out_p):
    """Fold BN into the Linear layers, concat w1/shortcut, zero-pad features to out_p."""
    w1f = params["w1"] * params["bn1_scale"]                       # (IN, OUT)
    b1f = params["b1"] * params["bn1_scale"] + params["bn1_shift"]  # (1, OUT)
    w2f = params["w2"] * params["bn2_scale"]                       # (OUT, OUT)
    b2f = params["b2"] * params["bn2_scale"] + params["bn2_shift"]  # (1, OUT)

    out_f = params["w1"].shape[1]
    pad_c = out_p - out_f
    pad_cols = lambda a: jnp.pad(a, ((0, 0), (0, pad_c)))

    w1p = pad_cols(w1f)                                   # (IN, OUT_P)
    wsp = pad_cols(params["ws"])                          # (IN, OUT_P)
    w2p = jnp.pad(w2f, ((0, pad_c), (0, pad_c)))          # (OUT_P, OUT_P)

    w1s = jnp.concatenate([w1p, wsp], axis=1)             # (IN, 2*OUT_P)
    b1s = jnp.concatenate([pad_cols(b1f), pad_cols(params["bs"])], axis=1)  # (1, 2*OUT_P)
    b2p = pad_cols(b2f)                                   # (1, OUT_P)
    return w1s, b1s, w2p, b2p


def residual_block(x, params, *, tb=None):
    """x: (B, IN) float32.  params: dict of arrays (see init_params)."""
    B, IN = x.shape
    OUT = params["w1"].shape[1]
    out_p = _round_up(OUT, 128)                # lane-dense padded feature width

    # Conservative budget: safe under v7x's 64 MiB VMEM and v5e's scoped defaults.
    vmem_budget = 24 * 1024 * 1024
    if tb is None:
        tb = _pick_tb(B, IN, out_p, vmem_budget)
    tb = max(8, _round_up(tb, 8))

    b_pad = _round_up(B, tb)
    xp = jnp.pad(x, ((0, b_pad - B), (0, 0))) if b_pad != B else x

    w1s, b1s, w2p, b2p = _fold_and_pad_params(params, out_p)

    est = _vmem_estimate_bytes(tb, IN, out_p)
    vmem_limit = int(min(64 * 1024 * 1024, max(16 * 1024 * 1024, 2 * est)))

    full = lambda i: (0, 0)  # parameters: same block every step (kept resident by Pallas)

    out = pl.pallas_call(
        _residual_block_kernel,
        out_shape=jax.ShapeDtypeStruct((b_pad, out_p), x.dtype),
        grid_spec=pltpu.PrefetchScalarGridSpec(
            num_scalar_prefetch=0,
            grid=(b_pad // tb,),
            in_specs=[
                pl.BlockSpec((tb, IN), lambda i: (i, 0)),    # x tile over batch
                pl.BlockSpec((IN, 2 * out_p), full),         # [w1*bn1_scale | w_shortcut]
                pl.BlockSpec((1, 2 * out_p), full),          # [b1' | b_shortcut]
                pl.BlockSpec((out_p, out_p), full),          # w2*bn2_scale
                pl.BlockSpec((1, out_p), full),              # b2'
            ],
            out_specs=pl.BlockSpec((tb, out_p), lambda i: (i, 0)),
        ),
        compiler_params=pltpu.CompilerParams(
            dimension_semantics=("parallel",),
            vmem_limit_bytes=vmem_limit,
        ),
    )(xp, w1s, b1s, w2p, b2p)

    return out[:B, :OUT]


# ---------------------------------------------------------------------------
# Parameters / reference
# ---------------------------------------------------------------------------
def init_params(key, in_features, out_features, eps=1e-5):
    """Deterministic synthetic parameters matching the PyTorch module's shapes."""
    ks = jax.random.split(key, 10)

    def linear(kw, kb, fan_in, fan_out):
        # PyTorch Linear stores weight as (out, in); transpose to (in, out) for x @ W.
        bound = 1.0 / jnp.sqrt(fan_in)
        w = jax.random.uniform(kw, (fan_out, fan_in), jnp.float32, -bound, bound)
        b = jax.random.uniform(kb, (fan_out,), jnp.float32, -bound, bound)
        return w.T, b.reshape(1, fan_out)

    w1, b1 = linear(ks[0], ks[1], in_features, out_features)
    w2, b2 = linear(ks[2], ks[3], out_features, out_features)
    ws, bs = linear(ks[4], ks[5], in_features, out_features)

    def bn(kg, kb, n):
        gamma = 1.0 + 0.1 * jax.random.normal(kg, (n,), jnp.float32)
        beta = 0.1 * jax.random.normal(kb, (n,), jnp.float32)
        running_mean = jnp.zeros((n,), jnp.float32)
        running_var = jnp.ones((n,), jnp.float32)
        scale = gamma / jnp.sqrt(running_var + eps)
        shift = beta - running_mean * scale
        return scale.reshape(1, n), shift.reshape(1, n)

    bn1_scale, bn1_shift = bn(ks[6], ks[7], out_features)
    bn2_scale, bn2_shift = bn(ks[8], ks[9], out_features)

    return {
        "w1": w1, "b1": b1, "bn1_scale": bn1_scale, "bn1_shift": bn1_shift,
        "w2": w2, "b2": b2, "bn2_scale": bn2_scale, "bn2_shift": bn2_shift,
        "ws": ws, "bs": bs,
    }


def residual_block_ref(x, p):
    """Plain-JAX reference (unfused, unfolded) for correctness check."""
    h = x @ p["w1"] + p["b1"]
    h = h * p["bn1_scale"] + p["bn1_shift"]
    h = jnp.maximum(h, 0.0)
    z = h @ p["w2"] + p["b2"]
    z = z * p["bn2_scale"] + p["bn2_shift"]
    sc = x @ p["ws"] + p["bs"]
    return jnp.maximum(z + sc, 0.0)


if __name__ == "__main__":
    key = jax.random.PRNGKey(0)
    k_x, k_p = jax.random.split(key)

    B, IN, OUT = 16, 32, 64
    x = jax.random.normal(k_x, (B, IN), jnp.float32)
    params = init_params(k_p, IN, OUT)

    out = residual_block(x, params)          # tb auto-picked (8 here -> 2 grid steps)
    out = jax.block_until_ready(out)

    ref = residual_block_ref(x, params)
    assert out.shape == (B, OUT)
    assert jnp.allclose(out, ref, atol=1e-4, rtol=1e-4), "mismatch vs reference"

    print("KERNEL_OK")
</pallas_src>

<mosaic_0001>
module attributes {stable_mosaic.version = 11 : i64} {
  func.func @_residual_block_kernel(%arg0: i32, %arg1: memref<8x32xf32, #tpu.memory_space<vmem>>, %arg2: memref<32x256xf32, #tpu.memory_space<vmem>>, %arg3: memref<1x256xf32, #tpu.memory_space<vmem>>, %arg4: memref<128x128xf32, #tpu.memory_space<vmem>>, %arg5: memref<1x128xf32, #tpu.memory_space<vmem>>, %arg6: memref<8x128xf32, #tpu.memory_space<vmem>>) attributes {dimension_semantics = [#tpu.dimension_semantics<parallel>], iteration_bounds = array<i64: 2>, scalar_prefetch = 0 : i64, scratch_operands = 0 : i64, tpu.core_type = #tpu.core_type<tc>, window_params = [{transform_indices = @transform_0, window_bounds = array<i64: 8, 32>}, {pipeline_mode = #tpu.pipeline_mode<synchronous>, transform_indices = @transform_1, window_bounds = array<i64: 32, 256>}, {pipeline_mode = #tpu.pipeline_mode<synchronous>, transform_indices = @transform_2, window_bounds = array<i64: 1, 256>}, {pipeline_mode = #tpu.pipeline_mode<synchronous>, transform_indices = @transform_3, window_bounds = array<i64: 128, 128>}, {pipeline_mode = #tpu.pipeline_mode<synchronous>, transform_indices = @transform_4, window_bounds = array<i64: 1, 128>}, {transform_indices = @transform_5, window_bounds = array<i64: 8, 128>}]} {
    %c0 = arith.constant 0 : index
    %c0_0 = arith.constant 0 : index
    %0 = vector.load %arg1[%c0, %c0_0] : memref<8x32xf32, #tpu.memory_space<vmem>>, vector<8x32xf32>
    %c0_1 = arith.constant 0 : index
    %c0_2 = arith.constant 0 : index
    %1 = vector.load %arg2[%c0_1, %c0_2] : memref<32x256xf32, #tpu.memory_space<vmem>>, vector<32x256xf32>
    %cst = arith.constant dense<0.000000e+00> : vector<8x256xf32>
    %2 = tpu.matmul %0, %1, %cst {dimension_numbers = #tpu.dot_dimension_numbers<[1], [0], [0], [1], [0, 0, 1, 1], [], []>} : vector<8x32xf32>, vector<32x256xf32>, vector<8x256xf32> -> vector<8x256xf32>
    %c0_3 = arith.constant 0 : index
    %c0_4 = arith.constant 0 : index
    %3 = vector.load %arg3[%c0_3, %c0_4] : memref<1x256xf32, #tpu.memory_space<vmem>>, vector<1x256xf32>
    %4 = vector.broadcast %3 : vector<1x256xf32> to vector<8x256xf32>
    %5 = arith.addf %2, %4 : vector<8x256xf32>
    %6 = vector.extract_strided_slice %5 {offsets = [0, 0], sizes = [8, 128], strides = [1, 1]} : vector<8x256xf32> to vector<8x128xf32>
    %cst_5 = arith.constant 0.000000e+00 : f32
    %7 = vector.broadcast %cst_5 : f32 to vector<8x128xf32>
    %8 = arith.maximumf %6, %7 : vector<8x128xf32>
    %9 = vector.extract_strided_slice %5 {offsets = [0, 128], sizes = [8, 128], strides = [1, 1]} : vector<8x256xf32> to vector<8x128xf32>
    %c0_6 = arith.constant 0 : index
    %c0_7 = arith.constant 0 : index
    %10 = vector.load %arg4[%c0_6, %c0_7] : memref<128x128xf32, #tpu.memory_space<vmem>>, vector<128x128xf32>
    %cst_8 = arith.constant dense<0.000000e+00> : vector<8x128xf32>
    %11 = tpu.matmul %8, %10, %cst_8 {dimension_numbers = #tpu.dot_dimension_numbers<[1], [0], [0], [1], [0, 0, 1, 1], [], []>} : vector<8x128xf32>, vector<128x128xf32>, vector<8x128xf32> -> vector<8x128xf32>
    %c0_9 = arith.constant 0 : index
    %c0_10 = arith.constant 0 : index
    %12 = vector.load %arg5[%c0_9, %c0_10] : memref<1x128xf32, #tpu.memory_space<vmem>>, vector<1x128xf32>
    %13 = vector.broadcast %12 : vector<1x128xf32> to vector<8x128xf32>
    %14 = arith.addf %11, %13 : vector<8x128xf32>
    %15 = arith.addf %14, %9 : vector<8x128xf32>
    %cst_11 = arith.constant 0.000000e+00 : f32
    %16 = vector.broadcast %cst_11 : f32 to vector<8x128xf32>
    %17 = arith.maximumf %15, %16 : vector<8x128xf32>
    %c0_12 = arith.constant 0 : index
    %c0_13 = arith.constant 0 : index
    %18 = vector.load %arg6[%c0_12, %c0_13] : memref<8x128xf32, #tpu.memory_space<vmem>>, vector<8x128xf32>
    tpu.vector_store %arg6[%c0_12, %c0_13], %17 {strides = array<i32>} : memref<8x128xf32, #tpu.memory_space<vmem>>, vector<8x128xf32>,
    return
  }
  func.func @transform_0(%arg0: i32) -> (i32, i32) {
    %c0_i32 = arith.constant 0 : i32
    %c0_i32_0 = arith.constant 0 : i32
    return %arg0, %c0_i32 : i32, i32
  }
  func.func @transform_1(%arg0: i32) -> (i32, i32) {
    %c0_i32 = arith.constant 0 : i32
    %c0_i32_0 = arith.constant 0 : i32
    %c0_i32_1 = arith.constant 0 : i32
    return %c0_i32, %c0_i32_0 : i32, i32
  }
  func.func @transform_2(%arg0: i32) -> (i32, i32) {
    %c0_i32 = arith.constant 0 : i32
    %c0_i32_0 = arith.constant 0 : i32
    %c0_i32_1 = arith.constant 0 : i32
    return %c0_i32, %c0_i32_0 : i32, i32
  }
  func.func @transform_3(%arg0: i32) -> (i32, i32) {
    %c0_i32 = arith.constant 0 : i32
    %c0_i32_0 = arith.constant 0 : i32
    %c0_i32_1 = arith.constant 0 : i32
    return %c0_i32, %c0_i32_0 : i32, i32
  }
  func.func @transform_4(%arg0: i32) -> (i32, i32) {
    %c0_i32 = arith.constant 0 : i32
    %c0_i32_0 = arith.constant 0 : i32
    %c0_i32_1 = arith.constant 0 : i32
    return %c0_i32, %c0_i32_0 : i32, i32
  }
  func.func @transform_5(%arg0: i32) -> (i32, i32) {
    %c0_i32 = arith.constant 0 : i32
    %c0_i32_0 = arith.constant 0 : i32
    return %arg0, %c0_i32 : i32, i32
  }
}

</mosaic_0001>

<bundles_post_ra>
// kernel: tpu_custom_call.1
= control target key start
LH: loop header
LB: loop body
LE: loop exit
PB: predicated region body
PF: predicated region fallthrough
CT: control target
= control target key end

     0   :  { %10 = vsyncpa [#allocation3], 0  ;;  %s1184_s0 = inlined_call_operand.hbm [shape: f32[16,32], index: 0, kind: input, shape index: {}]   ;;  %s1185_s1 = inlined_call_operand.hbm [shape: f32[32,256], index: 1, kind: input, shape index: {}]   ;;  %s1186_s2 = inlined_call_operand.vmem [shape: f32[1,256], index: 2, kind: input, shape index: {}]   ;;  %s1187_s3 = inlined_call_operand.hbm [shape: f32[128,128], index: 3, kind: input, shape index: {}]   ;;  %s1188_s4 = inlined_call_operand.vmem [shape: f32[1,128], index: 4, kind: input, shape index: {}]   ;;  %s1189_s5 = inlined_call_operand.hbm [shape: f32[16,128], index: 5, kind: output, shape index: {}]  }
   0x1   :  { %12 = vsyncpa [#allocation3 + $0x1], 0 }
   0x2   :  { %13 = vsyncpa [#allocation6], 0 }
   0x3   :  { %14 = vsyncpa [#allocation4], 0 }
   0x4   :  { %16 = vsyncpa [#allocation4 + $0x1], 0  ;;  %s940_s18 = smov 0   ;;  %s942_s19 = smov 0  }
   0x5   :  { %s944_s20 = smov 0   ;;  %s946_s21 = smov 0  }
   0x6 LB: > { %s961_s22 = sadd.s32 4294967295, %s897_s21   ;;  %s565_s23 = sadd.s32 4294967294, %s897_s21   ;;  %s897_s21 = sphi %s946_s21, %s1209_s21   ;;  %s893_s20 = sphi %s944_s20, %s1208_s20   ;;  %s889_s19 = sphi %s942_s19, %s1207_s19   ;;  %s885_s18 = sphi %s940_s18, %s1206_s18  }
   0x7   : > { %p42_p0 = scmp.ne.s32.totalorder %s889_s19, %s885_s18  ;;  %p1190_p1 = scmp.eq.s32.totalorder %s961_s22, 0 }
   0x8   : > { %p156_p3 = scmp.eq.s32.totalorder %s565_s23, 1  ;;  %p566_p5 = scmp.ge.s32.totalorder %s897_s21, 1 }
   0x9   : > { %p970_p4 = por %p1190_p1, %p42_p0  ;;  %p163_p7 = scmp.lt.s32.totalorder %s897_s21, 3 }
   0xa   : > { %p975_p6 = por %p156_p3, %p42_p0  ;;  %s899_s27 = smov [#allocation5]  }
   0xb   : > { %s1193_s24 = scalar_select %p970_p4, 1, 0 }
   0xc   : > { %s1194_s25 = scalar_select %p975_p6, 1, 0 }
   0xd   : > { %p980_p8 = pnand %p566_p5, %p163_p7  ;;  %s175_s28 = sshll.u32 %s899_s27, 4  ;;  %s984_s28 = int_to_ptr.vmem [resolvable:$true] %s175_s28 }
   0xe   : > { %s900_s30 = smov [#allocation7]   ;;  %s741_s9 = scalar_lea.hbm %s1185_s1, 1024 }
   0xf   : > { %p679_p9 = pneg %p980_p8  ;;  %s191_s6 = sshll.u32 %s900_s30, 4  ;;  %s995_s6 = int_to_ptr.vmem [resolvable:$true] %s191_s6 }
  0x10   : > { %p742_p12 = scmp.ne.s32.totalorder %s1185_s1, %s741_s9  ;;  %p748_p5 = scmp.lt.u32.totalorder %s741_s9, %s1185_s1 }
  0x11   : > { %p991_p11 = pnand %p679_p9, %p1190_p1 }
  0x13   : > { %p743_p13 = pneg %p991_p11 }
  0x15   : > { %p744_p0 = pnand %p743_p13, %p742_p12 }
  0x17   : > { %p745_p3 = pneg %p744_p0 }
  0x19   : > { %p750_p7 = pnand %p748_p5, %p745_p3 }
  0x1b   : > { %753 = shalt.err (!%p750_p7)
}
  0x1c   : > { %s754_s14 = scalar_lea.vmem %s984_s28, 1024  ;;  %p762_p2 = scmp.lt.s32.totalorder %s984_s28, %s984_s28 }
  0x1d   : > { %p755_p9 = scmp.ne.s32.totalorder %s984_s28, %s754_s14  ;;  %p763_p12 = scmp.lt.s32.totalorder %s754_s14, %s754_s14 }
  0x1f   : > { %p757_p10 = pnand %p755_p9, %p743_p13  ;;  %p764_p0 = por %p763_p12, %p762_p2 }
  0x21   : > { %p758_p1 = pneg %p757_p10 }
  0x23   : > { %p765_p6 = pnand %p764_p0, %p758_p1 }
  0x25   : > { %768 = shalt.err (!%p765_p6)
}
  0x26   : > { %s901_s15 = smov 256   ;;  %s902_s16 = smov 16  }
  0x27   : > { %682 = dma.hbm_to_vmem [thread:$0]  (!%p991_p11), %s1185_s1, 1024, %s984_s28, [#allocation6], %s901_s15, %s901_s15, %s902_s16  }
  0x28   : > { %s769_s7 = scalar_lea.hbm %s1187_s3, 2048 }
  0x29   : > { %p770_p2 = scmp.ne.s32.totalorder %s1187_s3, %s769_s7  ;;  %p776_p10 = scmp.lt.u32.totalorder %s769_s7, %s1187_s3 }
  0x2b   : > { %p772_p1 = pnand %p770_p2, %p743_p13 }
  0x2d   : > { %p773_p6 = pneg %p772_p1 }
  0x2f   : > { %p778_p3 = pnand %p776_p10, %p773_p6 }
  0x31   : > { %781 = shalt.err (!%p778_p3)
}
  0x32   : > { %s782_s28 = scalar_lea.vmem %s995_s6, 2048  ;;  %p790_p12 = scmp.lt.s32.totalorder %s995_s6, %s995_s6 }
  0x33   : > { %p783_p5 = scmp.ne.s32.totalorder %s995_s6, %s782_s28  ;;  %p791_p0 = scmp.lt.s32.totalorder %s782_s28, %s782_s28 }
  0x35   : > { %p785_p7 = pnand %p783_p5, %p743_p13  ;;  %p792_p2 = por %p791_p0, %p790_p12 }
  0x37   : > { %p786_p9 = pneg %p785_p7 }
  0x39   : > { %p793_p1 = pnand %p792_p2, %p786_p9 }
  0x3b   : > { %796 = shalt.err (!%p793_p1)
}
  0x3c   : > { %s903_s12 = smov 128   ;;  %s904_s13 = smov 8  }
  0x3d   : > { %685 = dma.hbm_to_vmem [thread:$0]  (!%p991_p11), %s1187_s3, 2048, %s995_s6, [#allocation6], %s903_s12, %s903_s12, %s904_s13  }
  0x3e   : > { %s1050_s16 = sadd.s32 1, %s897_s21   ;;  %s29_s23 = sadd.s32 1, %s893_s20 }
  0x3f   : > { %s26_s17 = ssub.s32 %s897_s21, %s1050_s16  ;;  %p36_p6 = scmp.ne.s32.totalorder %s893_s20, %s889_s19 }
  0x40   : > { %p27_p13 = scmp.eq.s32.totalorder %s26_s17, 0  ;;  %p37_p10 = scmp.eq.s32.totalorder %s897_s21, 0 }
  0x41   : > { %p1197_p5 = scmp.eq.s32.totalorder %s961_s22, 1  ;;  %p696_p9 = scmp.lt.s32.totalorder %s897_s21, 2 }
  0x42   : > { %s1059_s27 = scalar_select %p27_p13, %s893_s20, %s29_s23  }
  0x43   : > { %p38_p3 = por %p37_p10, %p36_p6  ;;  %p1063_p7 = por %p1197_p5, %p36_p6 }
  0x44   : > { %s208_s29 = sand.u32 1, %s893_s20   ;;  %s571_s6 = sshll.u32 %s897_s21, 7 }
  0x45   : > { %s1198_s30 = scalar_select %p1063_p7, 1, 0 }
  0x46   : > { %s570_s7 = sshll.u32 %s208_s29, 3  ;;  %s1073_s10 = scalar_lea.hbm %s1184_s0, %s571_s6 }
  0x47   : > { %s212_s11 = scalar_lea.vmem [#allocation2], %s570_s7  ;;  %p1077_p11 = pnand %p696_p9, %p38_p3 }
  0x48   : > { %s219_s28 = sshll.u32 %s212_s11, 4  ;;  %s209_s13 = scalar_lea.sflag [#allocation3], %s208_s29  ;;  %s1075_s28 = int_to_ptr.vmem [resolvable:$true] %s219_s28 }
  0x49   : > { %s797_s14 = scalar_lea.hbm %s1073_s10, 128  ;;  %p799_p0 = pneg %p1077_p11 }
  0x4a   : > { %p798_p12 = scmp.ne.s32.totalorder %s1073_s10, %s797_s14  ;;  %s802_s23 = scalar_lea.hbm %s1184_s0, 256 }
  0x4b   : > { %p803_p13 = scmp.lt.u32.totalorder %s1073_s10, %s1184_s0  ;;  %p804_p6 = scmp.lt.u32.totalorder %s802_s23, %s797_s14 }
  0x4c   : > { %p800_p2 = pnand %p799_p0, %p798_p12  ;;  %p806_p3 = scmp.lt.u32.totalorder %s797_s14, %s1073_s10 }
  0x4d   : > { %p805_p10 = por %p804_p6, %p803_p13 }
  0x4e   : > { %p801_p1 = pneg %p800_p2 }
  0x4f   : > { %p807_p5 = por %p806_p3, %p805_p10 }
  0x51   : > { %p808_p9 = pnand %p807_p5, %p801_p1 }
  0x53   : > { %811 = shalt.err (!%p808_p9)
}
  0x54   : > { %s812_s29 = scalar_lea.vmem %s1075_s28, 128  ;;  %s905_s8 = smov [#allocation2]  }
  0x55   : > { %p813_p12 = scmp.ne.s32.totalorder %s1075_s28, %s812_s29  ;;  %s817_s9 = sshll.u32 %s905_s8, 4  ;;  %s818_s9 = int_to_ptr.vmem [resolvable:$false] %s817_s9 }
  0x56   : > { %s819_s11 = scalar_lea.vmem %s818_s9, 256  ;;  %p820_p4 = scmp.lt.s32.totalorder %s1075_s28, %s818_s9 }
  0x57   : > { %p815_p2 = pnand %p813_p12, %p799_p0  ;;  %p821_p13 = scmp.lt.s32.totalorder %s819_s11, %s812_s29 }
  0x59   : > { %p816_p7 = pneg %p815_p2  ;;  %p822_p6 = por %p821_p13, %p820_p4 }
  0x5b   : > { %p823_p10 = pnand %p822_p6, %p816_p7 }
  0x5d   : > { %826 = shalt.err (!%p823_p10)
}
  0x5e   : > { %689 = dma.hbm_to_vmem [thread:$0]  (!%p1077_p11), %s1073_s10, 128, %s1075_s28, %s209_s13  }
  0x5f   : > { %228 = sbr.rel (%p980_p8) target bundleno = 565 (0x235), region = 40  ;;  %s1109_s14 = sand.u32 (!%p980_p8), 1, %s889_s19  }
  0x60   : > { %s573_s15 = sshll.u32 (!%p980_p8), %s1109_s14, 3  ;;  %s231_s17 = scalar_lea.sflag (!%p980_p8), [#allocation3], %s1109_s14 }
  0x61   : > { %s1115_s23 = scalar_lea.vmem (!%p980_p8), [#allocation2], %s573_s15  ;;  %p1200_p4 = scmp.ne.s32.totalorder (!%p980_p8), %s1193_s24, 0 }
  0x66   : > { %872 = dma.done.wait (%p1200_p4), %s231_s17, 128  }
  0x67   : > { %874 = vsyncadd (%p1200_p4), %s231_s17, 4294967168  ;;  %p1201_p7 = scmp.eq.s32.totalorder %s961_s22, 0 }
  0x69   : > { %876 = dma.done.wait (%p1201_p7), [#allocation6], 3072   ;;  %p1202_p8 = pmov %p1201_p7 }
  0x6a   : > { %v906_v0 = vmov 0.0   ;;  %v907_v1 = vmov 0.0|0.0   ;;  %v271_v2 = vld [vmem:[#allocation5 + $0x8] sm:$0xff]  ;;  %v273_v3 = vld [vmem:[#allocation5 + $0x18] sm:$0xff]  ;;  %v270_v4 = vld [vmem:[#allocation5] sm:$0xff]  ;;  %vm290_vm0 = vcmask 261120   ;;  %v280_v39 = vlaneseq }
  0x6b   : > { %878 = vsyncadd (%p1202_p8), [#allocation6], 4294964224  ;;  %358 = vmatprep.mubr.f32.mxu0 %v906_v0  ;;  %643 = vmatprep.subr.bf16.mxu1 %v907_v1  ;;  %v635_v5 = vpack.c.bf16 %v273_v3, %v271_v2  ;;  %v272_v6 = vld [vmem:[#allocation5 + $0x10] sm:$0xff]  ;;  %v275_v7 = vld [vmem:[#allocation5 + $0x28] sm:$0xff]  ;;  %vm908_vm1 = vmmov 0   ;;  %s580_s12 = sshll.u32 %s961_s22, 7 }
  0x6c   : > { %v277_v8 = vld [vmem:[#allocation5 + $0x38] sm:$0xff]  ;;  %v637_v9 = vpack.c.bf16 %v272_v6, %v270_v4  ;;  %v274_v11 = vld [vmem:[#allocation5 + $0x20] sm:$0xff]  ;;  %v276_v12 = vld [vmem:[#allocation5 + $0x30] sm:$0xff]  ;;  %632 = vmatprep.mubr.msk.f32.mxu1 %vm908_vm1, %v906_v0  ;;  %v281_v40 = vshrl.u32 %v280_v39, 7  ;;  %s268_s13 = scalar_lea.vmem [#allocation8], %s573_s15  ;;  %s1140_s8 = scalar_lea.hbm %s1189_s5, %s580_s12 }
  0x6d   : > { %v639_v10 = vpack.c.bf16 %v277_v8, %v275_v7  ;;  %636 = vmatprep.subr.bf16.mxu0 %v635_v5  ;;  %v366_v13 = vld [vmem:[#allocation7] sm:$0xff]  ;;  %v367_v14 = vld [vmem:[#allocation7 + $0x8] sm:$0xff]  ;;  %v368_v15 = vld [vmem:[#allocation7 + $0x10] sm:$0xff]  ;;  %v641_v16 = vpack.c.bf16 %v276_v12, %v274_v11  ;;  %s476_s7 = sshll.u32 %s268_s13, 4  ;;  %s463_s9 = scalar_lea.sflag [#allocation4], %s1109_s14  ;;  %s1142_s7 = int_to_ptr.vmem [resolvable:$true] %s476_s7 }
  0x6e   : > { %638 = vmatpush1.bf16.msra.mxu0 %v637_v9  ;;  %v644_v17 = vpack.c.bf16 %v367_v14, %v366_v13  ;;  %v369_v18 = vld [vmem:[#allocation7 + $0x18] sm:$0xff]  ;;  %v370_v20 = vld [vmem:[#allocation7 + $0x20] sm:$0xff]  ;;  %v371_v21 = vld [vmem:[#allocation7 + $0x28] sm:$0xff]  ;;  %v282_v41 = vsub.s32 0, %v281_v40  ;;  %v286_v48 = vsub.s32 1, %v281_v40  ;;  %s827_s11 = scalar_lea.vmem %s1142_s7, 128 }
  0x6f   : > { %640 = vmatprep.subr.bf16.mxu0 %v639_v10  ;;  %v647_v19 = vpack.c.bf16 %v369_v18, %v368_v15  ;;  %v269_v22 = vld [vmem:[%s1115_s23] sm:$0xff]  ;;  %v650_v23 = vpack.c.bf16 %v371_v21, %v370_v20  ;;  %v374_v27 = vld [vmem:[#allocation7 + $0x40] sm:$0xff]  ;;  %v375_v28 = vld [vmem:[#allocation7 + $0x48] sm:$0xff]  ;;  %p828_p11 = scmp.ne.s32.totalorder %s1142_s7, %s827_s11  ;;  %p1203_p0 = scmp.ne.s32.totalorder %s1198_s30, 0 }
  0x70   : > { %645 = vmatpush3.bf16.msra.mxu1 %v644_v17  ;;  %v372_v24 = vld [vmem:[#allocation7 + $0x30] sm:$0xff]  ;;  %v373_v25 = vld [vmem:[#allocation7 + $0x38] sm:$0xff]  ;;  %v656_v29 = vpack.c.bf16 %v375_v28, %v374_v27  ;;  %v378_v33 = vld [vmem:[#allocation7 + $0x60] sm:$0xff]  ;;  %s909_s22 = smov [#allocation8]  }
  0x71   : > { %646 = vmatprep.subr.bf16.mxu1 %v907_v1  ;;  %v653_v26 = vpack.c.bf16 %v373_v25, %v372_v24  ;;  %v376_v30 = vld [vmem:[#allocation7 + $0x50] sm:$0xff]  ;;  %v377_v31 = vld [vmem:[#allocation7 + $0x58] sm:$0xff]  ;;  %v379_v34 = vld [vmem:[#allocation7 + $0x68] sm:$0xff]  ;;  %p829_p1 = pnand %p828_p11, %p1203_p0  ;;  %s831_s15 = sshll.u32 %s909_s22, 4  ;;  %s832_s15 = int_to_ptr.vmem [resolvable:$false] %s831_s15 }
  0x72   : > { %642 = vmatpush1.bf16.msra.mxu0 %v641_v16  ;;  %v659_v32 = vpack.c.bf16 %v377_v31, %v376_v30  ;;  %v662_v35 = vpack.c.bf16 %v379_v34, %v378_v33  ;;  %v380_v36 = vld [vmem:[#allocation7 + $0x70] sm:$0xff]  ;;  %v381_v37 = vld [vmem:[#allocation7 + $0x78] sm:$0xff]  ;;  %s833_s17 = scalar_lea.vmem %s832_s15, 256  ;;  %p834_p5 = scmp.lt.s32.totalorder %s1142_s7, %s832_s15 }
  0x73   : > { %v665_v38 = vpack.c.bf16 %v381_v37, %v380_v36  ;;  %v278_v42 = vld [vmem:[%s1186_s2] sm:$0x3]  ;;  %p830_p3 = pneg %p829_p1  ;;  %p835_p9 = scmp.lt.s32.totalorder %s833_s17, %s827_s11 }
  0x74   : > { %648 = vmatpush3.bf16.msra.mxu1 %v647_v19  ;;  %v283_v43 = vrot.slane %v278_v42, %v282_v41  ;;  %v287_v49 = vrot.slane %v278_v42, %v286_v48  ;;  %v578_v50 = vld [vmem:[%s1188_s4] ss:$0 sm:$0xff] }
  0x75   : > { %577 = vmatmul.mubr.msk.f32.vlgmr.msra.gmra.mrb[0].mxu0 %vm290_vm0, %v269_v22  ;;  %649 = vmatprep.subr.bf16.mxu1 %v907_v1  ;;  %p836_p12 = por %p835_p9, %p834_p5 }
  0x77   : > { %p837_p2 = pnand %p836_p12, %p830_p3 }
  0x78   : > { %651 = vmatpush3.bf16.msra.mxu1 %v650_v23 }
  0x79   : > { %652 = vmatprep.subr.bf16.mxu1 %v907_v1 }
  0x7c   : > { %654 = vmatpush3.bf16.msra.mxu1 %v653_v26 }
  0x7d   : > { %655 = vmatprep.subr.bf16.mxu1 %v907_v1 }
  0x80   : > { %657 = vmatpush3.bf16.msra.mxu1 %v656_v29 }
  0x81   : > { %658 = vmatprep.subr.bf16.mxu1 %v907_v1 }
  0x84   : > { %660 = vmatpush3.bf16.msra.mxu1 %v659_v32 }
  0x85   : > { %661 = vmatprep.subr.bf16.mxu1 %v907_v1 }
  0x88   : > { %663 = vmatpush3.bf16.msra.mxu1 %v662_v35 }
  0x89   : > { %664 = vmatprep.subr.bf16.mxu1 %v907_v1 }
  0x8c   : > { %666 = vmatpush3.bf16.msra.mxu1 %v665_v38 }
 0x148   : > { %v360_v44 = vpop.f32.mrb[0].mxu0 }
 0x149   : > { %v361_v45 = vadd.f32 %v360_v44, %v283_v43  ;;  %v362_v46 = vpop.f32.mrb[1].mxu0 }
 0x14a   : > { %v363_v52 = vadd.f32 %v362_v46, %v287_v49 }
 0x14b   : > { %v365_v47 = vmax.f32 %v361_v45, 0.0 }
 0x14d   : > { %633 = vmatmul.mubr.f32.vlgmr.msra.gmra.mrb[0].mxu1 %v365_v47 }
 0x220   : > { %v455_v51 = vpop.f32.mrb[0].mxu1 }
 0x221   : > { %v456_v53 = vadd.f32 %v578_v50, %v455_v51  ;;  %v634_v54 = vpop.f32.mrb[1].mxu1 }
 0x223   : > { %v459_v55 = vadd.f32 %v456_v53, %v363_v52 }
 0x225   : > { %v460_v56 = vmax.f32 %v459_v55, 0.0 }
 0x227   : > { %461 = vst [vmem:[%s268_s13] sm:$0xff] %v460_v56 }
 0x228   : > { %840 = shalt.err (!%p837_p2)
}
 0x229   : > { %s841_s14 = scalar_lea.hbm %s1140_s8, 128  ;;  %s845_s26 = scalar_lea.hbm %s1189_s5, 256 }
 0x22a   : > { %p842_p13 = scmp.ne.s32.totalorder %s1140_s8, %s841_s14  ;;  %p846_p4 = scmp.lt.u32.totalorder %s1140_s8, %s1189_s5 }
 0x22b   : > { %p847_p7 = scmp.lt.u32.totalorder %s845_s26, %s841_s14  ;;  %p849_p11 = scmp.lt.u32.totalorder %s841_s14, %s1140_s8 }
 0x22c   : > { %p843_p6 = pnand %p842_p13, %p1203_p0 }
 0x22d   : > { %p848_p8 = por %p847_p7, %p846_p4 }
 0x22e   : > { %p844_p10 = pneg %p843_p6 }
 0x22f   : > { %p850_p1 = por %p849_p11, %p848_p8 }
 0x231   : > { %p851_p3 = pnand %p850_p1, %p844_p10 }
 0x233   : > { %854 = shalt.err (!%p851_p3)
}
 0x234   : > { %677 = dma.vmem_to_hbm [thread:$0]  (%p1203_p0), %s1142_s7, 128, %s1140_s8, %s463_s9  }
 0x235 PF: > { %s488_s12 = sand.u32 1, %s885_s18   ;;  %p1204_p5 = scmp.ne.s32.totalorder %s1194_s25, 0 }
 0x236   : > { %p1205_p9 = scmp.ge.s32.totalorder %s897_s21, 2  ;;  %s489_s13 = scalar_lea.sflag [#allocation4], %s488_s12 }
 0x238   : > { %p691_p12 = pnand %p1205_p9, %p1204_p5 }
 0x23a   : > { %880 = dma.done.wait (!%p691_p12), %s489_s13, 128  }
 0x23b   : > { %882 = vsyncadd (!%p691_p12), %s489_s13, 4294967168  ;;  %p19_p2 = scmp.ge.s32.totalorder %s1050_s16, 4   ;;  %s1206_s18 = smov %s889_s19 }
 0x23c   : > { %s1207_s19 = smov %s893_s20  ;;  %s1208_s20 = smov %s1059_s27 }
 0x23d   : > { %s1209_s21 = smov %s1050_s16  ;;  %21 = sbr.rel (!%p19_p2) target bundleno = 6 (0x6), region = 93 }
 0x244   :  { %494 = vsyncpa [#allocation3], 1 }
 0x245   :  { %496 = vsyncpa [#allocation3 + $0x1], 1 }
 0x246   :  { %497 = vsyncpa [#allocation6], 1 }
 0x247   :  { %498 = vsyncpa [#allocation4], 1 }
 0x248   :  { %500 = vsyncpa [#allocation4 + $0x1], 1 }

</bundles_post_ra>
